<compile_context>
chip_gen: v7x
topology: tpu7x:2x2x1
jax: 0.10.0
libtpu: 0.0.40
codegen_flags: <defaults>
</compile_context>

<pallas_src>
import functools

import jax
import jax.numpy as jnp
from jax.experimental import pallas as pl
from jax.experimental.pallas import tpu as pltpu


_MAX_X_BLOCK_BYTES = 4 << 20          # ~4 MiB of x per grid step
_VMEM_LIMIT_BYTES = 40 * 1024 * 1024  # safe on v5e/v6e (128 MiB) and v7x (64 MiB)


def _round_up(v, m):
    return (v + m - 1) // m * m


def _pow2_floor(n):
    p = 1
    while p * 2 <= n:
        p *= 2
    return p


def _choose_ts(S, C):
    """Spatial tile width (lanes): multiple of 128, ~<=4 MiB of x per step."""
    cap = _pow2_floor(max(128, _MAX_X_BLOCK_BYTES // (4 * C)))
    cap = min(cap, 1 << 19)
    return min(_round_up(S, 128), cap)


def _fold_lanes(v, fold_w):
    """(C, w) -> (C, fold_w) partial sums using only lane-aligned VPU adds.

    Requires w % fold_w == 0 and fold_w % 128 == 0 (slices stay lane-tile
    aligned, so no relayouts / cross-lane XLU work in the hot loop).
    """
    w = v.shape[-1]
    acc = None
    while w > fold_w:
        if (w // fold_w) % 2 == 1:
            tail = v[:, w - fold_w:]
            acc = tail if acc is None else acc + tail
            w -= fold_w
            v = v[:, :w]
            continue
        h = w // 2
        v = v[:, :h] + v[:, h:]
        w = h
    return v if acc is None else v + acc


def _dice_sums_kernel(*refs, C, ts, fold_w, s_total, labels_mode, has_mask):
    """Accumulates [sum(x*oh*m), sum(x*m), sum(oh*m)] into out_ref.

    Block shapes:
      x_ref  : (1, C, ts)  float
      y_ref  : (1, 1, ts)  int32 label map   (labels_mode=True)
               (1, C, ts)  float one-hot     (labels_mode=False)
      m_ref  : (1, 1, ts)  float mask        (only if has_mask)
      out_ref: (1, 3, C, fold_w) float32 (revisited across the S grid axis)
    """
    if has_mask:
        x_ref, y_ref, m_ref, out_ref = refs
    else:
        x_ref, y_ref, out_ref = refs
        m_ref = None

    s_idx = pl.program_id(1)

    @pl.when(s_idx == 0)
    def _():
        out_ref[...] = jnp.zeros_like(out_ref)

    tail = (s_total % ts) != 0  # static (trace-time) decision
    if tail:
        pos = s_idx * ts + jax.lax.broadcasted_iota(jnp.int32, (1, ts), 1)
        valid = pos < s_total

    x = x_ref[0].astype(jnp.float32)            # (C, ts)
    if tail:
        x = jnp.where(valid, x, 0.0)

    if labels_mode:
        lbl = y_ref[0]                          # (1, ts) int32
        ch = jax.lax.broadcasted_iota(jnp.int32, (C, ts), 0)
        oh = lbl == ch                          # in-kernel one-hot
        if tail:
            oh = jnp.logical_and(oh, valid)
        ohf = oh.astype(jnp.float32)
    else:
        ohf = y_ref[0].astype(jnp.float32)      # (C, ts) one-hot / soft target
        if tail:
            ohf = jnp.where(valid, ohf, 0.0)

    if has_mask:
        m = m_ref[0].astype(jnp.float32)        # (1, ts)
        if tail:
            m = jnp.where(valid, m, 0.0)
        xm = x * m
        ym = ohf * m
    else:
        xm = x
        ym = ohf
    xy = xm * ohf                               # x * onehot * mask

    out_ref[0, 0] += _fold_lanes(xy, fold_w)
    out_ref[0, 1] += _fold_lanes(xm, fold_w)
    out_ref[0, 2] += _fold_lanes(ym, fold_w)


def _tp_fp_fn_sums(x3, y3, m3, labels_mode):
    """x3: (B,C,S) float; y3: (B,1,S) int32 labels or (B,C,S) float one-hot;
    m3: optional (B,1,S) float mask.  Returns tp, fp, fn each of shape (B,C)."""
    B, C, S = x3.shape
    ts = _choose_ts(S, C)
    if ts % 512 == 0:
        fold_w = 512
    elif ts % 256 == 0:
        fold_w = 256
    else:
        fold_w = 128
    grid = (B, pl.cdiv(S, ts))

    kernel = functools.partial(
        _dice_sums_kernel, C=C, ts=ts, fold_w=fold_w, s_total=S,
        labels_mode=labels_mode, has_mask=m3 is not None)

    in_specs = [pl.BlockSpec((1, C, ts), lambda b, s: (b, 0, s))]
    if labels_mode:
        in_specs.append(pl.BlockSpec((1, 1, ts), lambda b, s: (b, 0, s)))
    else:
        in_specs.append(pl.BlockSpec((1, C, ts), lambda b, s: (b, 0, s)))
    args = [x3, y3]
    if m3 is not None:
        in_specs.append(pl.BlockSpec((1, 1, ts), lambda b, s: (b, 0, s)))
        args.append(m3)

    out = pl.pallas_call(
        kernel,
        out_shape=jax.ShapeDtypeStruct((B, 3, C, fold_w), jnp.float32),
        grid_spec=pltpu.PrefetchScalarGridSpec(
            num_scalar_prefetch=0,
            grid=grid,
            in_specs=in_specs,
            out_specs=pl.BlockSpec((1, 3, C, fold_w),
                                   lambda b, s: (b, 0, 0, 0)),
        ),
        compiler_params=pltpu.CompilerParams(
            dimension_semantics=("parallel", "arbitrary"),
            vmem_limit_bytes=_VMEM_LIMIT_BYTES),
    )(*args)

    sums = out.sum(axis=-1)          # (B, 3, C) — tiny, plain JAX
    tp = sums[:, 0, :]
    fp = sums[:, 1, :] - tp          # sum(x*m)  - sum(x*oh*m)  = sum(x*(1-oh)*m)
    fn = sums[:, 2, :] - tp          # sum(oh*m) - sum(x*oh*m)  = sum((1-x)*oh*m)
    return tp, fp, fn


def soft_dice_loss(x, y, loss_mask=None, *, apply_nonlin=None,
                   batch_dice=False, do_bg=True, smooth=1.0):
    """JAX/Pallas port of nnunet SoftDiceLoss.forward (square=False).

    x: (b, c, *spatial) float — network output
    y: label map (b, 1, *spatial) / (b, *spatial) int, or one-hot (b, c, *spatial)
    loss_mask: optional (b, 1, *spatial), 1 for valid / 0 for invalid pixels
    """
    if apply_nonlin is not None:
        x = apply_nonlin(x)
    x = x.astype(jnp.float32)

    b, c = x.shape[0], x.shape[1]
    S = 1
    for s in x.shape[2:]:
        S *= s
    x3 = x.reshape(b, c, S)

    # mirror the torch gt handling
    if y.ndim == x.ndim - 1:
        y = y.reshape((y.shape[0], 1) + y.shape[1:])
    if y.shape == x.shape:
        y3 = y.astype(jnp.float32).reshape(b, c, S)
        labels_mode = False
    else:
        y3 = y.astype(jnp.int32).reshape(b, 1, S)
        labels_mode = True

    m3 = None
    if loss_mask is not None:
        m3 = loss_mask.astype(jnp.float32).reshape(b, 1, S)

    tp, fp, fn = _tp_fp_fn_sums(x3, y3, m3, labels_mode)   # each (b, c)

    if batch_dice:
        tp = tp.sum(axis=0)
        fp = fp.sum(axis=0)
        fn = fn.sum(axis=0)

    nominator = 2.0 * tp + smooth
    denominator = 2.0 * tp + fp + fn + smooth
    dc = nominator / denominator

    if not do_bg:
        dc = dc[1:] if batch_dice else dc[:, 1:]

    return -dc.mean()


def _reference_soft_dice(x, y_onehot, mask=None, batch_dice=False,
                         do_bg=True, smooth=1.0):
    """Pure-JAX reference mirroring the PyTorch code, for validation."""
    axes = tuple(range(2, x.ndim))
    if batch_dice:
        axes = (0,) + axes
    tp = x * y_onehot
    fp = x * (1 - y_onehot)
    fn = (1 - x) * y_onehot
    if mask is not None:
        tp = tp * mask
        fp = fp * mask
        fn = fn * mask
    tp = tp.sum(axes)
    fp = fp.sum(axes)
    fn = fn.sum(axes)
    dc = (2 * tp + smooth) / (2 * tp + fp + fn + smooth)
    if not do_bg:
        dc = dc[1:] if batch_dice else dc[:, 1:]
    return -dc.mean()


if __name__ == "__main__":
    key = jax.random.PRNGKey(0)
    k1, k2, k3 = jax.random.split(key, 3)

    B, C, H, W = 2, 4, 16, 16
    # synthetic "network output" after a softmax-like nonlin (values in [0,1])
    x = jax.nn.softmax(jax.random.normal(k1, (B, C, H, W), jnp.float32), axis=1)
    # integer label map (b, 1, h, w)
    y = jax.random.randint(k2, (B, 1, H, W), 0, C).astype(jnp.int32)
    # binary loss mask (b, 1, h, w)
    mask = (jax.random.uniform(k3, (B, 1, H, W)) > 0.25).astype(jnp.float32)

    y_onehot = jax.nn.one_hot(y[:, 0], C, axis=1, dtype=jnp.float32)

    # unmasked path (label map, in-kernel one-hot)
    loss = soft_dice_loss(x, y, batch_dice=False, do_bg=True, smooth=1.0)
    loss = jax.block_until_ready(loss)
    ref = _reference_soft_dice(x, y_onehot)
    assert jnp.allclose(loss, ref, atol=1e-5, rtol=1e-5), (loss, ref)

    # fused masked path
    loss_m = soft_dice_loss(x, y, loss_mask=mask)
    loss_m = jax.block_until_ready(loss_m)
    ref_m = _reference_soft_dice(x, y_onehot, mask=mask)
    assert jnp.allclose(loss_m, ref_m, atol=1e-5, rtol=1e-5), (loss_m, ref_m)

    print("KERNEL_OK")
</pallas_src>

<mosaic_0001>
module attributes {stable_mosaic.version = 11 : i64} {
  func.func @_dice_sums_kernel(%arg0: i32, %arg1: i32, %arg2: memref<1x4x256xf32, #tpu.memory_space<vmem>>, %arg3: memref<1x1x256xi32, #tpu.memory_space<vmem>>, %arg4: memref<1x3x4x256xf32, #tpu.memory_space<vmem>>) attributes {dimension_semantics = [#tpu.dimension_semantics<parallel>, #tpu.dimension_semantics<arbitrary>], iteration_bounds = array<i64: 2, 1>, scalar_prefetch = 0 : i64, scratch_operands = 0 : i64, tpu.core_type = #tpu.core_type<tc>, window_params = [{transform_indices = @transform_0, window_bounds = array<i64: 1, 4, 256>}, {transform_indices = @transform_1, window_bounds = array<i64: 1, 1, 256>}, {transform_indices = @transform_2, window_bounds = array<i64: 1, 3, 4, 256>}]} {
    %c0_i32 = arith.constant 0 : i32
    %0 = arith.cmpi eq, %arg1, %c0_i32 : i32
    %1 = arith.extui %0 : i1 to i32
    %c0_i32_0 = arith.constant 0 : i32
    %2 = arith.cmpi ne, %1, %c0_i32_0 : i32
    scf.if %2 {
      %cst = arith.constant 0.000000e+00 : f32
      %31 = vector.broadcast %cst : f32 to vector<1x3x4x256xf32>
      %c0_28 = arith.constant 0 : index
      %c0_29 = arith.constant 0 : index
      %c0_30 = arith.constant 0 : index
      %c0_31 = arith.constant 0 : index
      %32 = vector.load %arg4[%c0_28, %c0_29, %c0_30, %c0_31] : memref<1x3x4x256xf32, #tpu.memory_space<vmem>>, vector<1x3x4x256xf32>
      tpu.vector_store %arg4[%c0_28, %c0_29, %c0_30, %c0_31], %31 {strides = array<i32>} : memref<1x3x4x256xf32, #tpu.memory_space<vmem>>, vector<1x3x4x256xf32>,
    } else {
    }
    %c0 = arith.constant 0 : index
    %c0_1 = arith.constant 0 : index
    %c0_2 = arith.constant 0 : index
    %3 = vector.load %arg2[%c0, %c0_1, %c0_2] : memref<1x4x256xf32, #tpu.memory_space<vmem>>, vector<1x4x256xf32>
    %4 = vector.shape_cast %3 : vector<1x4x256xf32> to vector<4x256xf32>
    %c0_3 = arith.constant 0 : index
    %c0_4 = arith.constant 0 : index
    %c0_5 = arith.constant 0 : index
    %5 = vector.load %arg3[%c0_3, %c0_4, %c0_5] : memref<1x1x256xi32, #tpu.memory_space<vmem>>, vector<1x1x256xi32>
    %6 = vector.shape_cast %5 : vector<1x1x256xi32> to vector<1x256xi32>
    %7 = tpu.iota {dimensions = array<i32: 0>} : vector<4x256xi32>
    %8 = vector.broadcast %6 : vector<1x256xi32> to vector<4x256xi32>
    %9 = arith.cmpi eq, %8, %7 : vector<4x256xi32>
    %10 = arith.extui %9 : vector<4x256xi1> to vector<4x256xi32>
    %11 = arith.sitofp %10 : vector<4x256xi32> to vector<4x256xf32>
    %12 = arith.mulf %4, %11 : vector<4x256xf32>
    %c0_6 = arith.constant 0 : index
    %c0_7 = arith.constant 0 : index
    %c0_8 = arith.constant 0 : index
    %c0_9 = arith.constant 0 : index
    %13 = vector.load %arg4[%c0_6, %c0_7, %c0_8, %c0_9] : memref<1x3x4x256xf32, #tpu.memory_space<vmem>>, vector<1x1x4x256xf32>
    %14 = vector.shape_cast %13 : vector<1x1x4x256xf32> to vector<4x256xf32>
    %15 = arith.addf %14, %12 : vector<4x256xf32>
    %c0_10 = arith.constant 0 : index
    %c0_11 = arith.constant 0 : index
    %c0_12 = arith.constant 0 : index
    %c0_13 = arith.constant 0 : index
    %16 = vector.load %arg4[%c0_10, %c0_11, %c0_12, %c0_13] : memref<1x3x4x256xf32, #tpu.memory_space<vmem>>, vector<1x1x4x256xf32>
    %17 = vector.shape_cast %16 : vector<1x1x4x256xf32> to vector<4x256xf32>
    %18 = vector.shape_cast %15 : vector<4x256xf32> to vector<1x1x4x256xf32>
    tpu.vector_store %arg4[%c0_10, %c0_11, %c0_12, %c0_13], %18 {strides = array<i32>} : memref<1x3x4x256xf32, #tpu.memory_space<vmem>>, vector<1x1x4x256xf32>,
    %c0_14 = arith.constant 0 : index
    %c1 = arith.constant 1 : index
    %c0_15 = arith.constant 0 : index
    %c0_16 = arith.constant 0 : index
    %19 = vector.load %arg4[%c0_14, %c1, %c0_15, %c0_16] : memref<1x3x4x256xf32, #tpu.memory_space<vmem>>, vector<1x1x4x256xf32>
    %20 = vector.shape_cast %19 : vector<1x1x4x256xf32> to vector<4x256xf32>
    %21 = arith.addf %20, %4 : vector<4x256xf32>
    %c0_17 = arith.constant 0 : index
    %c1_18 = arith.constant 1 : index
    %c0_19 = arith.constant 0 : index
    %c0_20 = arith.constant 0 : index
    %22 = vector.load %arg4[%c0_17, %c1_18, %c0_19, %c0_20] : memref<1x3x4x256xf32, #tpu.memory_space<vmem>>, vector<1x1x4x256xf32>
    %23 = vector.shape_cast %22 : vector<1x1x4x256xf32> to vector<4x256xf32>
    %24 = vector.shape_cast %21 : vector<4x256xf32> to vector<1x1x4x256xf32>
    tpu.vector_store %arg4[%c0_17, %c1_18, %c0_19, %c0_20], %24 {strides = array<i32>} : memref<1x3x4x256xf32, #tpu.memory_space<vmem>>, vector<1x1x4x256xf32>,
    %c0_21 = arith.constant 0 : index
    %c2 = arith.constant 2 : index
    %c0_22 = arith.constant 0 : index
    %c0_23 = arith.constant 0 : index
    %25 = vector.load %arg4[%c0_21, %c2, %c0_22, %c0_23] : memref<1x3x4x256xf32, #tpu.memory_space<vmem>>, vector<1x1x4x256xf32>
    %26 = vector.shape_cast %25 : vector<1x1x4x256xf32> to vector<4x256xf32>
    %27 = arith.addf %26, %11 : vector<4x256xf32>
    %c0_24 = arith.constant 0 : index
    %c2_25 = arith.constant 2 : index
    %c0_26 = arith.constant 0 : index
    %c0_27 = arith.constant 0 : index
    %28 = vector.load %arg4[%c0_24, %c2_25, %c0_26, %c0_27] : memref<1x3x4x256xf32, #tpu.memory_space<vmem>>, vector<1x1x4x256xf32>
    %29 = vector.shape_cast %28 : vector<1x1x4x256xf32> to vector<4x256xf32>
    %30 = vector.shape_cast %27 : vector<4x256xf32> to vector<1x1x4x256xf32>
    tpu.vector_store %arg4[%c0_24, %c2_25, %c0_26, %c0_27], %30 {strides = array<i32>} : memref<1x3x4x256xf32, #tpu.memory_space<vmem>>, vector<1x1x4x256xf32>,
    return
  }
  func.func @transform_0(%arg0: i32, %arg1: i32) -> (i32, i32, i32) {
    %c0_i32 = arith.constant 0 : i32
    %c0_i32_0 = arith.constant 0 : i32
    return %arg0, %c0_i32, %arg1 : i32, i32, i32
  }
  func.func @transform_1(%arg0: i32, %arg1: i32) -> (i32, i32, i32) {
    %c0_i32 = arith.constant 0 : i32
    %c0_i32_0 = arith.constant 0 : i32
    return %arg0, %c0_i32, %arg1 : i32, i32, i32
  }
  func.func @transform_2(%arg0: i32, %arg1: i32) -> (i32, i32, i32, i32) {
    %c0_i32 = arith.constant 0 : i32
    %c0_i32_0 = arith.constant 0 : i32
    %c0_i32_1 = arith.constant 0 : i32
    %c0_i32_2 = arith.constant 0 : i32
    return %arg0, %c0_i32, %c0_i32_0, %c0_i32_1 : i32, i32, i32, i32
  }
}

</mosaic_0001>

<bundles_post_ra>
// kernel: tpu_custom_call.1
= control target key start
LH: loop header
LB: loop body
LE: loop exit
PB: predicated region body
PF: predicated region fallthrough
CT: control target
= control target key end

     0   :  { %7 = vsyncpa [#allocation3], 0  ;;  %s868_s0 = inlined_call_operand.hbm [shape: f32[2,4,256], index: 0, kind: input, shape index: {}]   ;;  %s869_s1 = inlined_call_operand.hbm [shape: s32[2,1,256], index: 1, kind: input, shape index: {}]   ;;  %s870_s2 = inlined_call_operand.hbm [shape: f32[2,3,4,256], index: 2, kind: output, shape index: {}]  }
   0x1   :  { %9 = vsyncpa [#allocation3 + $0x1], 0 }
   0x2   :  { %10 = vsyncpa [#allocation6], 0 }
   0x3   :  { %12 = vsyncpa [#allocation6 + $0x1], 0 }
   0x4   :  { %13 = vsyncpa [#allocation4], 0 }
   0x5   :  { %15 = vsyncpa [#allocation4 + $0x1], 0  ;;  %s650_s9 = smov 0   ;;  %s652_s10 = smov 0  }
   0x6   :  { %s654_s11 = smov 0   ;;  %s656_s12 = smov 0  }
   0x7   :  { %s658_s13 = smov 0   ;;  %s660_s14 = smov 0  }
   0x8 LB: > { %s385_s15 = sadd.s32 4294967295, %s627_s14   ;;  %s386_s16 = sadd.s32 4294967294, %s627_s14   ;;  %s627_s14 = sphi %s660_s14, %s21_s14   ;;  %s623_s13 = sphi %s658_s13, %s890_s13   ;;  %s619_s12 = sphi %s656_s12, %s889_s12   ;;  %s615_s11 = sphi %s654_s11, %s888_s11   ;;  %s611_s10 = sphi %s652_s10, %s887_s10   ;;  %s607_s9 = sphi %s650_s9, %s886_s9  }
   0x9   : > { %s33_s17 = sadd.s32 1, %s623_s13  ;;  %s42_s18 = sadd.s32 1, %s615_s11 }
   0xa   : > { %p35_p0 = scmp.ge.s32.totalorder %s33_s17, 2  ;;  %p49_p1 = scmp.ne.s32.totalorder %s615_s11, %s611_s10 }
   0xb   : > { %p50_p2 = scmp.eq.s32.totalorder %s627_s14, 0  ;;  %p55_p3 = scmp.ne.s32.totalorder %s611_s10, %s607_s9 }
   0xc   : > { %s892_s17 = smov (%p35_p0, %s33_s17), 0  ;;  %p56_p5 = scmp.eq.s32.totalorder %s385_s15, 0 }
   0xd   : > { %p691_p4 = por %p50_p2, %p49_p1  ;;  %s37_s20 = ssub.s32 %s623_s13, %s892_s17 }
   0xe   : > { %p107_p6 = scmp.eq.s32.totalorder %s385_s15, 1  ;;  %p40_p7 = scmp.eq.s32.totalorder %s37_s20, 0 }
   0xf   : > { %p697_p8 = por %p56_p5, %p55_p3  ;;  %p113_p10 = scmp.eq.s32.totalorder %s386_s16, 1 }
  0x10   : > { %p701_p9 = por %p107_p6, %p49_p1  ;;  %p428_p13 = scmp.lt.s32.totalorder %s627_s14, 2 }
  0x11   : > { %s874_s21 = scalar_select %p697_p8, 1, 0 }
  0x12   : > { %s875_s22 = scalar_select %p701_p9, 1, 0 }
  0x13   : > { %s706_s23 = scalar_select %p40_p7, %s615_s11, %s42_s18  }
  0x14   : > { %p708_p11 = por %p113_p10, %p55_p3  ;;  %s715_s25 = sand.u32 1, %s615_s11  }
  0x15   : > { %s389_s26 = sshll.u32 %s715_s25, 3  ;;  %s407_s27 = sshll.u32 %s623_s13, 7 }
  0x16   : > { %s876_s24 = scalar_select %p708_p11, 1, 0 }
  0x17   : > { %s722_s30 = scalar_lea.hbm %s868_s0, %s407_s27  ;;  %s137_s3 = scalar_lea.vmem [#allocation2], %s389_s26 }
  0x18   : > { %s147_s4 = sshll.u32 %s137_s3, 4  ;;  %p728_p0 = pnand %p428_p13, %p691_p4  ;;  %s724_s4 = int_to_ptr.vmem [resolvable:$true] %s147_s4 }
  0x19   : > { %s134_s6 = scalar_lea.sflag [#allocation3], %s715_s25  ;;  %s481_s7 = scalar_lea.hbm %s722_s30, 128 }
  0x1a   : > { %p482_p3 = scmp.ne.s32.totalorder %s722_s30, %s481_s7  ;;  %p483_p5 = pneg %p728_p0 }
  0x1b   : > { %s486_s16 = scalar_lea.hbm %s868_s0, 256  ;;  %p487_p4 = scmp.lt.u32.totalorder %s722_s30, %s868_s0 }
  0x1c   : > { %p484_p6 = pnand %p483_p5, %p482_p3  ;;  %p488_p10 = scmp.lt.u32.totalorder %s486_s16, %s481_s7 }
  0x1d   : > { %p490_p12 = scmp.lt.u32.totalorder %s481_s7, %s722_s30 }
  0x1e   : > { %p485_p7 = pneg %p484_p6  ;;  %p489_p13 = por %p488_p10, %p487_p4 }
  0x20   : > { %p491_p1 = por %p490_p12, %p489_p13 }
  0x22   : > { %p492_p2 = pnand %p491_p1, %p485_p7 }
  0x24   : > { %495 = shalt.err (!%p492_p2)
}
  0x25   : > { %s496_s20 = scalar_lea.vmem %s724_s4, 128  ;;  %s629_s26 = smov [#allocation2]  }
  0x26   : > { %p497_p3 = scmp.ne.s32.totalorder %s724_s4, %s496_s20  ;;  %s501_s27 = sshll.u32 %s629_s26, 4  ;;  %s502_s27 = int_to_ptr.vmem [resolvable:$false] %s501_s27 }
  0x27   : > { %s503_s28 = scalar_lea.vmem %s502_s27, 256  ;;  %p504_p9 = scmp.lt.s32.totalorder %s724_s4, %s502_s27 }
  0x28   : > { %p499_p6 = pnand %p497_p3, %p483_p5  ;;  %p505_p4 = scmp.lt.s32.totalorder %s503_s28, %s496_s20 }
  0x2a   : > { %p500_p11 = pneg %p499_p6  ;;  %p506_p10 = por %p505_p4, %p504_p9 }
  0x2c   : > { %p507_p12 = pnand %p506_p10, %p500_p11 }
  0x2e   : > { %510 = shalt.err (!%p507_p12)
}
  0x2f   : > { %420 = dma.hbm_to_vmem [thread:$0]  (!%p728_p0), %s722_s30, 128, %s724_s4, %s134_s6  }
  0x30   : > { %p878_p1 = scmp.lt.s32.totalorder %s627_s14, 3  ;;  %p879_p2 = scmp.ge.s32.totalorder %s627_s14, 1 }
  0x31   : > { %s392_s3 = sshll.u32 %s715_s25, 1  ;;  %s408_s7 = sshll.u32 %s623_s13, 5 }
  0x32   : > { %p764_p7 = pnand %p879_p2, %p878_p1  ;;  %s773_s16 = scalar_lea.hbm %s869_s1, %s408_s7 }
  0x33   : > { %s158_s18 = scalar_lea.vmem [#allocation5], %s392_s3  ;;  %s155_s30 = scalar_lea.sflag [#allocation6], %s715_s25 }
  0x34   : > { %s880_s29 = scalar_select %p764_p7, 1, 0 }
  0x35   : > { %s168_s19 = sshll.u32 %s158_s18, 4  ;;  %s511_s4 = scalar_lea.hbm %s773_s16, 32  ;;  %s169_s19 = int_to_ptr.vmem [resolvable:$true] %s168_s19 }
  0x36   : > { %p512_p9 = scmp.ne.s32.totalorder %s773_s16, %s511_s4  ;;  %s516_s26 = scalar_lea.hbm %s869_s1, 64 }
  0x37   : > { %p517_p3 = scmp.lt.u32.totalorder %s773_s16, %s869_s1  ;;  %p518_p6 = scmp.lt.u32.totalorder %s516_s26, %s511_s4 }
  0x38   : > { %p514_p11 = pnand %p512_p9, %p483_p5  ;;  %p520_p10 = scmp.lt.u32.totalorder %s511_s4, %s773_s16 }
  0x39   : > { %p519_p4 = por %p518_p6, %p517_p3 }
  0x3a   : > { %p515_p13 = pneg %p514_p11 }
  0x3b   : > { %p521_p12 = por %p520_p10, %p519_p4 }
  0x3d   : > { %p522_p1 = pnand %p521_p12, %p515_p13 }
  0x3f   : > { %525 = shalt.err (!%p522_p1)
}
  0x40   : > { %s526_s25 = scalar_lea.vmem %s169_s19, 32  ;;  %s630_s3 = smov [#allocation5]  }
  0x41   : > { %p527_p2 = scmp.ne.s32.totalorder %s169_s19, %s526_s25  ;;  %s531_s7 = sshll.u32 %s630_s3, 4  ;;  %s532_s7 = int_to_ptr.vmem [resolvable:$false] %s531_s7 }
  0x42   : > { %s533_s8 = scalar_lea.vmem %s532_s7, 64  ;;  %p534_p8 = scmp.lt.s32.totalorder %s169_s19, %s532_s7 }
  0x43   : > { %p529_p9 = pnand %p527_p2, %p483_p5  ;;  %p535_p7 = scmp.lt.s32.totalorder %s533_s8, %s526_s25 }
  0x45   : > { %p530_p11 = pneg %p529_p9  ;;  %p536_p3 = por %p535_p7, %p534_p8 }
  0x47   : > { %p537_p6 = pnand %p536_p3, %p530_p11 }
  0x49   : > { %540 = shalt.err (!%p537_p6)
}
  0x4a   : > { %423 = dma.hbm_to_vmem [thread:$0]  (!%p728_p0), %s773_s16, 32, %s169_s19, %s155_s30  }
  0x4b   : > { %p881_p13 = scmp.ne.s32.totalorder %s880_s29, 0 }
  0x4c   : > { %s798_s15 = sand.u32 (!%p881_p13), 1, %s611_s10   ;;  %p882_p5 = scmp.ne.s32.totalorder (!%p881_p13), %s874_s21, 0 }
  0x4d   : > { %177 = sbr.rel (%p881_p13) target bundleno = 117 (0x75), region = 28  ;;  %s396_s18 = sshll.u32 (!%p881_p13), %s798_s15, 3 }
  0x4e   : > { %s180_s4 = scalar_lea.sflag (!%p881_p13), [#allocation3], %s798_s15  ;;  %s183_s6 = scalar_lea.vmem (!%p881_p13), [#allocation2], %s396_s18 }
  0x54   : > { %594 = dma.done.wait (%p882_p5), %s180_s4, 128  }
  0x55   : > { %596 = vsyncadd (%p882_p5), %s180_s4, 4294967168  ;;  %s397_s5 = sshll.u32 %s798_s15, 1  ;;  %s189_s29 = scalar_lea.sflag [#allocation6], %s798_s15 }
  0x56   : > { %s192_s16 = scalar_lea.vmem [#allocation5], %s397_s5 }
  0x57   : > { %598 = dma.done.wait (%p882_p5), %s189_s29, 32  }
  0x58   : > { %600 = vsyncadd (%p882_p5), %s189_s29, 4294967264  ;;  %v229_v0 = vlaneseq  ;;  %s409_s19 = smul.u32 24, %s798_s15  ;;  %v227_v4 = vld [vmem:[%s183_s6] sm:$0xff]  ;;  %v228_v5 = vld [vmem:[%s192_s16] sm:$0x3]  ;;  %v631_v8 = vmov 0.0  }
  0x59   : > { %s410_s21 = smul.u32 384, %s619_s12  ;;  %s262_s25 = scalar_lea.sflag [#allocation4], %s798_s15 }
  0x5a   : > { %v230_v1 = vshrl.u32 %v229_v0, 7  ;;  %s217_s30 = scalar_lea.vmem [#allocation7], %s409_s19  ;;  %p883_p0 = scmp.ne.s32.totalorder %s875_s22, 0 }
  0x5b   : > { %401 = vst [vmem:[%s217_s30 + $0x8] sm:$0xff] %v227_v4  ;;  %s275_s20 = sshll.u32 %s217_s30, 4  ;;  %s817_s28 = scalar_lea.hbm %s870_s2, %s410_s21  ;;  %s819_s20 = int_to_ptr.vmem [resolvable:$true] %s275_s20 }
  0x5c   : > { %v233_v2 = vsub.s32 0, %v230_v1  ;;  %v237_v3 = vsub.s32 1, %v230_v1  ;;  %s541_s3 = scalar_lea.vmem %s819_s20, 384  ;;  %s632_s12 = smov [#allocation7]  }
  0x5d   : > { %p542_p8 = scmp.ne.s32.totalorder %s819_s20, %s541_s3  ;;  %s545_s7 = sshll.u32 %s632_s12, 4  ;;  %s546_s7 = int_to_ptr.vmem [resolvable:$false] %s545_s7 }
  0x5e   : > { %v234_v6 = vrot.slane %v228_v5, %v233_v2  ;;  %v238_v7 = vrot.slane %v228_v5, %v237_v3  ;;  %s547_s8 = scalar_lea.vmem %s546_s7, 768  ;;  %p548_p10 = scmp.lt.s32.totalorder %s819_s20, %s546_s7 }
  0x5f   : > { %p543_p7 = pnand %p542_p8, %p883_p0  ;;  %p549_p12 = scmp.lt.s32.totalorder %s547_s8, %s541_s3 }
  0x60   : > { %vm239_vm0 = vcmp.eq.s32.totalorder %v234_v6, %v230_v1  ;;  %vm240_vm1 = vcmp.eq.s32.totalorder %v238_v7, %v230_v1 }
  0x61   : > { %v398_v9 = vsel %vm239_vm0, 1.0, %v631_v8  ;;  %v399_v10 = vsel %vm240_vm1, 1.0, %v631_v8  ;;  %p544_p4 = pneg %p543_p7  ;;  %p550_p1 = por %p549_p12, %p548_p10 }
  0x62   : > { %v247_v11 = vcombine.low %v398_v9, %v399_v10 }
  0x63   : > { %p551_p2 = pnand %p550_p1, %p544_p4 }
  0x64   : > { %v249_v12 = vmul.f32 %v247_v11, %v227_v4  ;;  %403 = vst [vmem:[%s217_s30 + $0x10] sm:$0xff] %v247_v11 }
  0x66   : > { %252 = vst [vmem:[%s217_s30] sm:$0xff] %v249_v12 }
  0x67   : > { %554 = shalt.err (!%p551_p2)
}
  0x68   : > { %s555_s18 = scalar_lea.hbm %s817_s28, 384  ;;  %s559_s5 = scalar_lea.hbm %s870_s2, 768 }
  0x69   : > { %p556_p9 = scmp.ne.s32.totalorder %s817_s28, %s555_s18  ;;  %p560_p6 = scmp.lt.u32.totalorder %s817_s28, %s870_s2 }
  0x6a   : > { %p561_p13 = scmp.lt.u32.totalorder %s559_s5, %s555_s18  ;;  %p563_p8 = scmp.lt.u32.totalorder %s555_s18, %s817_s28 }
  0x6b   : > { %p557_p11 = pnand %p556_p9, %p883_p0 }
  0x6c   : > { %p562_p5 = por %p561_p13, %p560_p6 }
  0x6d   : > { %p558_p3 = pneg %p557_p11 }
  0x6e   : > { %p564_p7 = por %p563_p8, %p562_p5 }
  0x70   : > { %p565_p4 = pnand %p564_p7, %p558_p3 }
  0x72   : > { %568 = shalt.err (!%p565_p4)
}
  0x73   : > { %s633_s19 = smov 128   ;;  %s634_s30 = smov 8  }
  0x74   : > { %415 = dma.vmem_to_hbm [thread:$0]  (%p883_p0), %s819_s20, 384, %s817_s28, %s262_s25, %s633_s19, %s633_s19, %s634_s30  }
  0x75 PF: > { %s290_s21 = sand.u32 1, %s607_s9   ;;  %p884_p10 = scmp.ne.s32.totalorder %s876_s24, 0 }
  0x76   : > { %p885_p12 = scmp.ge.s32.totalorder %s627_s14, 2  ;;  %s291_s26 = scalar_lea.sflag [#allocation4], %s290_s21 }
  0x78   : > { %p425_p1 = pnand %p885_p12, %p884_p10 }
  0x7a   : > { %602 = dma.done.wait (!%p425_p1), %s291_s26, 384  }
  0x7b   : > { %604 = vsyncadd (!%p425_p1), %s291_s26, 4294966912  ;;  %s21_s14 = sadd.s32 1, %s627_s14   ;;  %s886_s9 = smov %s611_s10 }
  0x7c   : > { %p18_p2 = scmp.ge.s32.totalorder %s21_s14, 4   ;;  %s887_s10 = smov %s615_s11 }
  0x7d   : > { %s888_s11 = smov %s706_s23  ;;  %s889_s12 = smov %s623_s13 }
  0x7e   : > { %s890_s13 = smov %s892_s17  ;;  %20 = sbr.rel (!%p18_p2) target bundleno = 8 (0x8), region = 92 }
  0x85   :  { %296 = vsyncpa [#allocation3], 1 }
  0x86   :  { %298 = vsyncpa [#allocation3 + $0x1], 1 }
  0x87   :  { %299 = vsyncpa [#allocation6], 1 }
  0x88   :  { %301 = vsyncpa [#allocation6 + $0x1], 1 }
  0x89   :  { %302 = vsyncpa [#allocation4], 1 }
  0x8a   :  { %304 = vsyncpa [#allocation4 + $0x1], 1 }

</bundles_post_ra>
